<compile_context>
chip_gen: v6e
topology: v6e:2x2x1
jax: 0.10.0
libtpu: 0.0.40
codegen_flags: <defaults>
</compile_context>

<pallas_src>
import functools
import math

import numpy as np
import jax
import jax.numpy as jnp
from jax import lax
from jax.experimental import pallas as pl
from jax.experimental.pallas import tpu as pltpu

EPS = 1e-5
_VMEM_LIMIT = 32 * 1024 * 1024  # safe explicit scoped-VMEM budget on v5e/v6e/v7x


# ---------------------------------------------------------------------------
# Banded conv weights: 3x3 HWIO -> 3 x (W*Cin, W*Cout) matrices so the conv is
# three lane-dense MXU matmuls on (rows, W*C)-flattened activations.  The width
# (kw) taps and width zero-padding are folded into the banded structure.
# ---------------------------------------------------------------------------
def _banded_conv_weights(w_hwio, width):
    _, _, cin, cout = w_hwio.shape
    w_in = np.arange(width)[:, None]
    w_out = np.arange(width)[None, :]
    sel = np.stack([(w_in + 1 - w_out == k).astype(np.float32) for k in range(3)], 0)
    b = jnp.einsum("kjw,hkio->hjiwo", jnp.asarray(sel), w_hwio)  # (3,W,Cin,W,Cout)
    return b.reshape(3, width * cin, width * cout)


# ---------------------------------------------------------------------------
# Shared conv helper: 3x3 conv on a row-stacked (M, W*Cin) bf16 slab, M = NB*H.
# Height taps handled by shifting the f32 matmul *outputs* by +-1 row and zeroing
# rows that would cross a stacked-image boundary (and the top/bottom pad rows).
# ---------------------------------------------------------------------------
def _conv3x3_stacked(a_bf16, b_ref, h_img):
    m = a_bf16.shape[0]
    wc_out = b_ref.shape[2]
    zero = jnp.zeros((1, wc_out), jnp.float32)

    acc = jnp.dot(a_bf16, b_ref[1], preferred_element_type=jnp.float32)  # center row
    p0 = jnp.dot(a_bf16, b_ref[0], preferred_element_type=jnp.float32)   # top row tap
    sd = jnp.concatenate([zero, p0[: m - 1]], axis=0)                    # out[r] += p0[r-1]
    p2 = jnp.dot(a_bf16, b_ref[2], preferred_element_type=jnp.float32)   # bottom row tap
    su = jnp.concatenate([p2[1:], zero], axis=0)                         # out[r] += p2[r+1]

    if m > h_img:  # multiple images stacked: zero cross-image contributions
        row = lax.broadcasted_iota(jnp.int32, (m, 1), 0)
        sd = jnp.where(row % h_img == 0, 0.0, sd)
        su = jnp.where(row % h_img == h_img - 1, 0.0, su)
    return acc + sd + su


def _store_conv_and_stats(acc, y_ref, rs_ref, rq_ref):
    yb = acc.astype(y_ref.dtype)
    y_ref[...] = yb
    yf = yb.astype(jnp.float32)  # stats from the bf16-rounded values BN will see
    rs_ref[0] = jnp.sum(yf, axis=0, keepdims=True)
    rq_ref[0] = jnp.sum(yf * yf, axis=0, keepdims=True)


# ---------------------------------------------------------------------------
# Kernels
# ---------------------------------------------------------------------------
def _conv_stats_kernel(h_img, x_ref, b_ref, y_ref, rs_ref, rq_ref):
    # x_ref: (NB*H, W*Cin) bf16; b_ref: (3, W*Cin, W*Cout) bf16
    # y_ref: (NB*H, W*Cout) bf16; rs/rq: (1, 1, W*Cout) f32 partial BN stats.
    a = x_ref[...].astype(jnp.bfloat16)
    acc = _conv3x3_stacked(a, b_ref, h_img)
    _store_conv_and_stats(acc, y_ref, rs_ref, rq_ref)


def _bnrelu_conv_stats_kernel(h_img, x_ref, sc_ref, sh_ref, b_ref, y_ref, rs_ref, rq_ref):
    # BN(prev conv) + ReLU folded into this conv's input read.
    a = jnp.maximum(x_ref[...].astype(jnp.float32) * sc_ref[...] + sh_ref[...], 0.0)
    acc = _conv3x3_stacked(a.astype(jnp.bfloat16), b_ref, h_img)
    _store_conv_and_stats(acc, y_ref, rs_ref, rq_ref)


def _bnrelu_kernel(x_ref, sc_ref, sh_ref, o_ref):
    a = x_ref[...].astype(jnp.float32) * sc_ref[...] + sh_ref[...]
    o_ref[...] = jnp.maximum(a, 0.0).astype(o_ref.dtype)


# ---------------------------------------------------------------------------
# pallas_call wrappers
# ---------------------------------------------------------------------------
def _compiler_params(sem):
    return pltpu.CompilerParams(dimension_semantics=sem, vmem_limit_bytes=_VMEM_LIMIT)


def _conv_stats(x2, bmat, h, mb):
    rows, wc_in = x2.shape
    wc_out = bmat.shape[2]
    g = rows // mb
    kern = functools.partial(_conv_stats_kernel, h)
    return pl.pallas_call(
        kern,
        out_shape=(jax.ShapeDtypeStruct((rows, wc_out), jnp.bfloat16),
                   jax.ShapeDtypeStruct((g, 1, wc_out), jnp.float32),
                   jax.ShapeDtypeStruct((g, 1, wc_out), jnp.float32)),
        grid=(g,),
        in_specs=[pl.BlockSpec((mb, wc_in), lambda i: (i, 0)),
                  pl.BlockSpec((3, wc_in, wc_out), lambda i: (0, 0, 0))],
        out_specs=(pl.BlockSpec((mb, wc_out), lambda i: (i, 0)),
                   pl.BlockSpec((1, 1, wc_out), lambda i: (i, 0, 0)),
                   pl.BlockSpec((1, 1, wc_out), lambda i: (i, 0, 0))),
        compiler_params=_compiler_params(("parallel",)),
    )(x2, bmat)


def _bnrelu_conv_stats(y1, sc, sh, bmat, h, mb):
    rows, wc_in = y1.shape
    wc_out = bmat.shape[2]
    g = rows // mb
    kern = functools.partial(_bnrelu_conv_stats_kernel, h)
    return pl.pallas_call(
        kern,
        out_shape=(jax.ShapeDtypeStruct((rows, wc_out), jnp.bfloat16),
                   jax.ShapeDtypeStruct((g, 1, wc_out), jnp.float32),
                   jax.ShapeDtypeStruct((g, 1, wc_out), jnp.float32)),
        grid=(g,),
        in_specs=[pl.BlockSpec((mb, wc_in), lambda i: (i, 0)),
                  pl.BlockSpec((1, wc_in), lambda i: (0, 0)),
                  pl.BlockSpec((1, wc_in), lambda i: (0, 0)),
                  pl.BlockSpec((3, wc_in, wc_out), lambda i: (0, 0, 0))],
        out_specs=(pl.BlockSpec((mb, wc_out), lambda i: (i, 0)),
                   pl.BlockSpec((1, 1, wc_out), lambda i: (i, 0, 0)),
                   pl.BlockSpec((1, 1, wc_out), lambda i: (i, 0, 0))),
        compiler_params=_compiler_params(("parallel",)),
    )(y1, sc, sh, bmat)


def _row_tile(total, target=512):
    # Largest row tile <= target that divides `total` and keeps 8-row alignment.
    if total <= target:
        return total
    t = target - target % 8
    for cand in range(t, 7, -8):
        if total % cand == 0:
            return cand
    return total


def _bnrelu(y2, sc, sh):
    rows, wc = y2.shape
    th = _row_tile(rows)
    return pl.pallas_call(
        _bnrelu_kernel,
        out_shape=jax.ShapeDtypeStruct((rows, wc), jnp.float32),
        grid=(rows // th,),
        in_specs=[pl.BlockSpec((th, wc), lambda i: (i, 0)),
                  pl.BlockSpec((1, wc), lambda i: (0, 0)),
                  pl.BlockSpec((1, wc), lambda i: (0, 0))],
        out_specs=pl.BlockSpec((th, wc), lambda i: (i, 0)),
        compiler_params=_compiler_params(("parallel",)),
    )(y2, sc, sh)


# ---------------------------------------------------------------------------
# BN (training-mode batch stats) folded into per-channel scale/shift vectors,
# broadcast to the lane-dense (W*C) layout.  Tiny XLA math on (C,)-sized data.
# ---------------------------------------------------------------------------
def _bn_affine(rsum, rsumsq, gamma, beta, count, w, c):
    s = rsum.reshape(-1, w, c).sum(axis=(0, 1))
    q = rsumsq.reshape(-1, w, c).sum(axis=(0, 1))
    mean = s / count
    var = jnp.maximum(q / count - mean * mean, 0.0)  # biased variance (BN train mode)
    scale = gamma * lax.rsqrt(var + EPS)
    shift = beta - mean * scale
    scale_f = jnp.tile(scale, w).reshape(1, w * c).astype(jnp.float32)
    shift_f = jnp.tile(shift, w).reshape(1, w * c).astype(jnp.float32)
    return scale_f, shift_f


# ---------------------------------------------------------------------------
# DoubleConv forward (NCHW in / NCHW out, like the PyTorch module)
# ---------------------------------------------------------------------------
def double_conv(x_nchw, params, *, images_per_block=None):
    w1, g1, b1, w2, g2, b2 = params
    n, cin, h, w = x_nchw.shape
    c1 = w1.shape[-1]
    c2 = w2.shape[-1]

    # Pad Cin with zero channels so the conv1 lane dim W*Cin fills a 128-lane
    # multiple (MXU K / lane fill, esp. v5e).  Zero channels x zero weights = 0.
    unit = 128 // math.gcd(w, 128)
    cin_p = ((cin + unit - 1) // unit) * unit
    if cin_p > max(2 * cin, cin + 8):
        cin_p = cin
    if cin_p != cin:
        x_nchw = jnp.pad(x_nchw, ((0, 0), (0, cin_p - cin), (0, 0), (0, 0)))
        w1 = jnp.pad(w1, ((0, 0), (0, 0), (0, cin_p - cin), (0, 0)))

    # Images per grid step: fill MXU M (~128 rows) while keeping an even grid.
    nb = images_per_block or max(1, min(n, 128 // max(h, 1)))
    while n % nb:
        nb -= 1
    if (nb * h) % 8:
        nb = n            # fall back to a full-extent block (always legal)
    mb = nb * h

    # NCHW -> lane-dense (N*H, W*C) bf16 slab.
    # TODO(synk): drop these boundary layout transforms if the surrounding model
    # keeps activations channels-last (they are extra HBM passes executed by XLA).
    x2 = jnp.transpose(x_nchw, (0, 2, 3, 1)).reshape(n * h, w * cin_p).astype(jnp.bfloat16)

    b1m = _banded_conv_weights(w1, w).astype(jnp.bfloat16)
    b2m = _banded_conv_weights(w2, w).astype(jnp.bfloat16)

    cnt = float(n * h * w)

    # Pass 1: conv1 + BN1 partial stats.
    y1, rs1, rq1 = _conv_stats(x2, b1m, h, mb)
    sc1, sh1 = _bn_affine(rs1, rq1, g1, b1, cnt, w, c1)

    # Pass 2: BN1+ReLU fused into conv2's input read, conv2, + BN2 partial stats.
    y2, rs2, rq2 = _bnrelu_conv_stats(y1, sc1, sh1, b2m, h, mb)
    sc2, sh2 = _bn_affine(rs2, rq2, g2, b2, cnt, w, c2)

    # Pass 3: BN2 + ReLU (large-tile memory-bound pass, f32 output).
    out2 = _bnrelu(y2, sc2, sh2)

    out = out2.reshape(n, h, w, c2)
    return jnp.transpose(out, (0, 3, 1, 2))


def init_params(key, in_channels, out_channels):
    # Conv weights stored HWIO (3, 3, in, out); BN gamma=1, beta=0 (PyTorch defaults).
    k1, k2 = jax.random.split(key)
    w1 = jax.random.normal(k1, (3, 3, in_channels, out_channels),
                           jnp.float32) / jnp.sqrt(float(in_channels * 9))
    w2 = jax.random.normal(k2, (3, 3, out_channels, out_channels),
                           jnp.float32) / jnp.sqrt(float(out_channels * 9))
    g1 = jnp.ones((out_channels,), jnp.float32)
    b1 = jnp.zeros((out_channels,), jnp.float32)
    g2 = jnp.ones((out_channels,), jnp.float32)
    b2 = jnp.zeros((out_channels,), jnp.float32)
    return (w1, g1, b1, w2, g2, b2)


# ---------------------------------------------------------------------------
# Pure-JAX reference (XLA conv + BN + ReLU) for correctness checking
# ---------------------------------------------------------------------------
def _reference(x_nchw, params):
    w1, g1, b1, w2, g2, b2 = params

    def conv(x, w_hwio):
        return jax.lax.conv_general_dilated(
            x, w_hwio, window_strides=(1, 1), padding="SAME",
            dimension_numbers=("NCHW", "HWIO", "NCHW"))

    def bn_relu(y, g, b):
        mean = jnp.mean(y, axis=(0, 2, 3), keepdims=True)
        var = jnp.mean((y - mean) ** 2, axis=(0, 2, 3), keepdims=True)
        yn = (y - mean) * jax.lax.rsqrt(var + EPS)
        yn = yn * g.reshape(1, -1, 1, 1) + b.reshape(1, -1, 1, 1)
        return jnp.maximum(yn, 0.0)

    y = bn_relu(conv(x_nchw, w1), g1, b1)
    return bn_relu(conv(y, w2), g2, b2)


if __name__ == "__main__":
    key = jax.random.PRNGKey(0)
    kx, kp = jax.random.split(key)
    n, cin, cout, h, w = 2, 4, 8, 16, 16
    x = jax.random.normal(kx, (n, cin, h, w), jnp.float32)   # PyTorch-style NCHW
    params = init_params(kp, cin, cout)

    out = jax.block_until_ready(jax.jit(double_conv)(x, params))
    assert out.shape == (n, cout, h, w)
    assert bool(jnp.all(out >= 0.0))                         # ReLU output

    # Cross-check against the pure-JAX reference (loose tolerance: bf16 MXU
    # operands + bf16 intermediate activations in the Pallas path).
    ref = jax.block_until_ready(jax.jit(_reference)(x, params))
    np.testing.assert_allclose(np.asarray(out), np.asarray(ref), rtol=1e-1, atol=1e-1)

    print("KERNEL_OK")
</pallas_src>

<mosaic_0001>
module attributes {stable_mosaic.version = 11 : i64} {
  func.func @_conv_stats_kernel(%arg0: i32, %arg1: memref<32x128xbf16, #tpu.memory_space<vmem>>, %arg2: memref<3x128x128xbf16, #tpu.memory_space<vmem>>, %arg3: memref<32x128xbf16, #tpu.memory_space<vmem>>, %arg4: memref<1x1x128xf32, #tpu.memory_space<vmem>>, %arg5: memref<1x1x128xf32, #tpu.memory_space<vmem>>) attributes {dimension_semantics = [#tpu.dimension_semantics<parallel>], iteration_bounds = array<i64: 1>, scalar_prefetch = 0 : i64, scratch_operands = 0 : i64, tpu.core_type = #tpu.core_type<tc>, window_params = [{transform_indices = @transform_0, window_bounds = array<i64: 32, 128>}, {pipeline_mode = #tpu.pipeline_mode<synchronous>, transform_indices = @transform_1, window_bounds = array<i64: 3, 128, 128>}, {transform_indices = @transform_2, window_bounds = array<i64: 32, 128>}, {transform_indices = @transform_3, window_bounds = array<i64: 1, 1, 128>}, {transform_indices = @transform_4, window_bounds = array<i64: 1, 1, 128>}]} {
    %c0 = arith.constant 0 : index
    %c0_0 = arith.constant 0 : index
    %0 = vector.load %arg1[%c0, %c0_0] : memref<32x128xbf16, #tpu.memory_space<vmem>>, vector<32x128xbf16>
    %cst = arith.constant 0.000000e+00 : f32
    %1 = vector.broadcast %cst : f32 to vector<1x128xf32>
    %c1 = arith.constant 1 : index
    %c0_1 = arith.constant 0 : index
    %c0_2 = arith.constant 0 : index
    %2 = vector.load %arg2[%c1, %c0_1, %c0_2] : memref<3x128x128xbf16, #tpu.memory_space<vmem>>, vector<1x128x128xbf16>
    %3 = vector.shape_cast %2 : vector<1x128x128xbf16> to vector<128x128xbf16>
    %cst_3 = arith.constant dense<0.000000e+00> : vector<32x128xf32>
    %4 = tpu.matmul %0, %3, %cst_3 {dimension_numbers = #tpu.dot_dimension_numbers<[1], [0], [0], [1], [0, 0, 1, 1], [], []>} : vector<32x128xbf16>, vector<128x128xbf16>, vector<32x128xf32> -> vector<32x128xf32>
    %c0_4 = arith.constant 0 : index
    %c0_5 = arith.constant 0 : index
    %c0_6 = arith.constant 0 : index
    %5 = vector.load %arg2[%c0_4, %c0_5, %c0_6] : memref<3x128x128xbf16, #tpu.memory_space<vmem>>, vector<1x128x128xbf16>
    %6 = vector.shape_cast %5 : vector<1x128x128xbf16> to vector<128x128xbf16>
    %cst_7 = arith.constant dense<0.000000e+00> : vector<32x128xf32>
    %7 = tpu.matmul %0, %6, %cst_7 {dimension_numbers = #tpu.dot_dimension_numbers<[1], [0], [0], [1], [0, 0, 1, 1], [], []>} : vector<32x128xbf16>, vector<128x128xbf16>, vector<32x128xf32> -> vector<32x128xf32>
    %8 = vector.extract_strided_slice %7 {offsets = [0, 0], sizes = [31, 128], strides = [1, 1]} : vector<32x128xf32> to vector<31x128xf32>
    %9 = tpu.concatenate %1, %8 in 0 : vector<1x128xf32>, vector<31x128xf32> -> vector<32x128xf32>
    %c2 = arith.constant 2 : index
    %c0_8 = arith.constant 0 : index
    %c0_9 = arith.constant 0 : index
    %10 = vector.load %arg2[%c2, %c0_8, %c0_9] : memref<3x128x128xbf16, #tpu.memory_space<vmem>>, vector<1x128x128xbf16>
    %11 = vector.shape_cast %10 : vector<1x128x128xbf16> to vector<128x128xbf16>
    %cst_10 = arith.constant dense<0.000000e+00> : vector<32x128xf32>
    %12 = tpu.matmul %0, %11, %cst_10 {dimension_numbers = #tpu.dot_dimension_numbers<[1], [0], [0], [1], [0, 0, 1, 1], [], []>} : vector<32x128xbf16>, vector<128x128xbf16>, vector<32x128xf32> -> vector<32x128xf32>
    %13 = vector.extract_strided_slice %12 {offsets = [1, 0], sizes = [31, 128], strides = [1, 1]} : vector<32x128xf32> to vector<31x128xf32>
    %14 = tpu.concatenate %13, %1 in 0 : vector<31x128xf32>, vector<1x128xf32> -> vector<32x128xf32>
    %15 = tpu.iota {dimensions = array<i32: 0>} : vector<32x1xi32>
    %c16_i32 = arith.constant 16 : i32
    %c0_i32 = arith.constant 0 : i32
    %16 = arith.cmpi eq, %c16_i32, %c0_i32 : i32
    %c1_i32 = arith.constant 1 : i32
    %17 = arith.select %16, %c1_i32, %c16_i32 : i32
    %18 = vector.broadcast %17 : i32 to vector<32x1xi32>
    %19 = arith.remsi %15, %18 : vector<32x1xi32>
    %c0_i32_11 = arith.constant 0 : i32
    %20 = vector.broadcast %c0_i32_11 : i32 to vector<32x1xi32>
    %21 = arith.cmpi ne, %19, %20 : vector<32x1xi32>
    %c0_i32_12 = arith.constant 0 : i32
    %22 = vector.broadcast %c0_i32_12 : i32 to vector<32x1xi32>
    %23 = arith.cmpi slt, %19, %22 : vector<32x1xi32>
    %c0_i32_13 = arith.constant 0 : i32
    %24 = arith.cmpi slt, %17, %c0_i32_13 : i32
    %25 = vector.broadcast %24 : i1 to vector<32x1xi1>
    %26 = vector.broadcast %25 : vector<32x1xi1> to vector<32x1xi1>
    %27 = arith.xori %23, %26 : vector<32x1xi1>
    %28 = arith.andi %27, %21 : vector<32x1xi1>
    %29 = vector.broadcast %17 : i32 to vector<32x1xi32>
    %30 = arith.addi %19, %29 : vector<32x1xi32>
    %31 = arith.select %28, %30, %19 : vector<32x1xi1>, vector<32x1xi32>
    %c0_i32_14 = arith.constant 0 : i32
    %32 = vector.broadcast %c0_i32_14 : i32 to vector<32x1xi32>
    %33 = arith.cmpi eq, %31, %32 : vector<32x1xi32>
    %cst_15 = arith.constant 0.000000e+00 : f32
    %34 = vector.shape_cast %33 : vector<32x1xi1> to vector<32x1xi1>
    %35 = vector.broadcast %34 : vector<32x1xi1> to vector<32x128xi1>
    %36 = vector.broadcast %cst_15 : f32 to vector<32x128xf32>
    %37 = arith.select %35, %36, %9 : vector<32x128xi1>, vector<32x128xf32>
    %c16_i32_16 = arith.constant 16 : i32
    %c0_i32_17 = arith.constant 0 : i32
    %38 = arith.cmpi eq, %c16_i32_16, %c0_i32_17 : i32
    %c1_i32_18 = arith.constant 1 : i32
    %39 = arith.select %38, %c1_i32_18, %c16_i32_16 : i32
    %40 = vector.broadcast %39 : i32 to vector<32x1xi32>
    %41 = arith.remsi %15, %40 : vector<32x1xi32>
    %c0_i32_19 = arith.constant 0 : i32
    %42 = vector.broadcast %c0_i32_19 : i32 to vector<32x1xi32>
    %43 = arith.cmpi ne, %41, %42 : vector<32x1xi32>
    %c0_i32_20 = arith.constant 0 : i32
    %44 = vector.broadcast %c0_i32_20 : i32 to vector<32x1xi32>
    %45 = arith.cmpi slt, %41, %44 : vector<32x1xi32>
    %c0_i32_21 = arith.constant 0 : i32
    %46 = arith.cmpi slt, %39, %c0_i32_21 : i32
    %47 = vector.broadcast %46 : i1 to vector<32x1xi1>
    %48 = vector.broadcast %47 : vector<32x1xi1> to vector<32x1xi1>
    %49 = arith.xori %45, %48 : vector<32x1xi1>
    %50 = arith.andi %49, %43 : vector<32x1xi1>
    %51 = vector.broadcast %39 : i32 to vector<32x1xi32>
    %52 = arith.addi %41, %51 : vector<32x1xi32>
    %53 = arith.select %50, %52, %41 : vector<32x1xi1>, vector<32x1xi32>
    %c15_i32 = arith.constant 15 : i32
    %54 = vector.broadcast %c15_i32 : i32 to vector<32x1xi32>
    %55 = arith.cmpi eq, %53, %54 : vector<32x1xi32>
    %cst_22 = arith.constant 0.000000e+00 : f32
    %56 = vector.shape_cast %55 : vector<32x1xi1> to vector<32x1xi1>
    %57 = vector.broadcast %56 : vector<32x1xi1> to vector<32x128xi1>
    %58 = vector.broadcast %cst_22 : f32 to vector<32x128xf32>
    %59 = arith.select %57, %58, %14 : vector<32x128xi1>, vector<32x128xf32>
    %60 = arith.addf %4, %37 : vector<32x128xf32>
    %61 = arith.addf %60, %59 : vector<32x128xf32>
    %62 = arith.truncf %61 : vector<32x128xf32> to vector<32x128xbf16>
    %c0_23 = arith.constant 0 : index
    %c0_24 = arith.constant 0 : index
    %63 = vector.load %arg3[%c0_23, %c0_24] : memref<32x128xbf16, #tpu.memory_space<vmem>>, vector<32x128xbf16>
    tpu.vector_store %arg3[%c0_23, %c0_24], %62 {strides = array<i32>} : memref<32x128xbf16, #tpu.memory_space<vmem>>, vector<32x128xbf16>,
    %64 = arith.extf %62 : vector<32x128xbf16> to vector<32x128xf32>
    %cst_25 = arith.constant dense<0.000000e+00> : vector<128xf32>
    %65 = vector.multi_reduction <add>, %64, %cst_25 [0] : vector<32x128xf32> to vector<128xf32>
    %66 = vector.shape_cast %65 : vector<128xf32> to vector<1x128xf32>
    %c0_26 = arith.constant 0 : index
    %c0_27 = arith.constant 0 : index
    %c0_28 = arith.constant 0 : index
    %67 = vector.load %arg4[%c0_26, %c0_27, %c0_28] : memref<1x1x128xf32, #tpu.memory_space<vmem>>, vector<1x1x128xf32>
    %68 = vector.shape_cast %67 : vector<1x1x128xf32> to vector<1x128xf32>
    %69 = vector.shape_cast %66 : vector<1x128xf32> to vector<1x1x128xf32>
    tpu.vector_store %arg4[%c0_26, %c0_27, %c0_28], %69 {strides = array<i32>} : memref<1x1x128xf32, #tpu.memory_space<vmem>>, vector<1x1x128xf32>,
    %70 = arith.mulf %64, %64 : vector<32x128xf32>
    %cst_29 = arith.constant dense<0.000000e+00> : vector<128xf32>
    %71 = vector.multi_reduction <add>, %70, %cst_29 [0] : vector<32x128xf32> to vector<128xf32>
    %72 = vector.shape_cast %71 : vector<128xf32> to vector<1x128xf32>
    %c0_30 = arith.constant 0 : index
    %c0_31 = arith.constant 0 : index
    %c0_32 = arith.constant 0 : index
    %73 = vector.load %arg5[%c0_30, %c0_31, %c0_32] : memref<1x1x128xf32, #tpu.memory_space<vmem>>, vector<1x1x128xf32>
    %74 = vector.shape_cast %73 : vector<1x1x128xf32> to vector<1x128xf32>
    %75 = vector.shape_cast %72 : vector<1x128xf32> to vector<1x1x128xf32>
    tpu.vector_store %arg5[%c0_30, %c0_31, %c0_32], %75 {strides = array<i32>} : memref<1x1x128xf32, #tpu.memory_space<vmem>>, vector<1x1x128xf32>,
    return
  }
  func.func @transform_0(%arg0: i32) -> (i32, i32) {
    %c0_i32 = arith.constant 0 : i32
    %c0_i32_0 = arith.constant 0 : i32
    return %arg0, %c0_i32 : i32, i32
  }
  func.func @transform_1(%arg0: i32) -> (i32, i32, i32) {
    %c0_i32 = arith.constant 0 : i32
    %c0_i32_0 = arith.constant 0 : i32
    %c0_i32_1 = arith.constant 0 : i32
    %c0_i32_2 = arith.constant 0 : i32
    return %c0_i32, %c0_i32_0, %c0_i32_1 : i32, i32, i32
  }
  func.func @transform_2(%arg0: i32) -> (i32, i32) {
    %c0_i32 = arith.constant 0 : i32
    %c0_i32_0 = arith.constant 0 : i32
    return %arg0, %c0_i32 : i32, i32
  }
  func.func @transform_3(%arg0: i32) -> (i32, i32, i32) {
    %c0_i32 = arith.constant 0 : i32
    %c0_i32_0 = arith.constant 0 : i32
    %c0_i32_1 = arith.constant 0 : i32
    return %arg0, %c0_i32, %c0_i32_0 : i32, i32, i32
  }
  func.func @transform_4(%arg0: i32) -> (i32, i32, i32) {
    %c0_i32 = arith.constant 0 : i32
    %c0_i32_0 = arith.constant 0 : i32
    %c0_i32_1 = arith.constant 0 : i32
    return %arg0, %c0_i32, %c0_i32_0 : i32, i32, i32
  }
}

module attributes {stable_mosaic.version = 11 : i64} {
  func.func @_bnrelu_conv_stats_kernel(%arg0: i32, %arg1: memref<32x128xbf16, #tpu.memory_space<vmem>>, %arg2: memref<1x128xf32, #tpu.memory_space<vmem>>, %arg3: memref<1x128xf32, #tpu.memory_space<vmem>>, %arg4: memref<3x128x128xbf16, #tpu.memory_space<vmem>>, %arg5: memref<32x128xbf16, #tpu.memory_space<vmem>>, %arg6: memref<1x1x128xf32, #tpu.memory_space<vmem>>, %arg7: memref<1x1x128xf32, #tpu.memory_space<vmem>>) attributes {dimension_semantics = [#tpu.dimension_semantics<parallel>], iteration_bounds = array<i64: 1>, scalar_prefetch = 0 : i64, scratch_operands = 0 : i64, tpu.core_type = #tpu.core_type<tc>, window_params = [{transform_indices = @transform_0, window_bounds = array<i64: 32, 128>}, {pipeline_mode = #tpu.pipeline_mode<synchronous>, transform_indices = @transform_1, window_bounds = array<i64: 1, 128>}, {pipeline_mode = #tpu.pipeline_mode<synchronous>, transform_indices = @transform_2, window_bounds = array<i64: 1, 128>}, {pipeline_mode = #tpu.pipeline_mode<synchronous>, transform_indices = @transform_3, window_bounds = array<i64: 3, 128, 128>}, {transform_indices = @transform_4, window_bounds = array<i64: 32, 128>}, {transform_indices = @transform_5, window_bounds = array<i64: 1, 1, 128>}, {transform_indices = @transform_6, window_bounds = array<i64: 1, 1, 128>}]} {
    %c0 = arith.constant 0 : index
    %c0_0 = arith.constant 0 : index
    %0 = vector.load %arg1[%c0, %c0_0] : memref<32x128xbf16, #tpu.memory_space<vmem>>, vector<32x128xbf16>
    %1 = arith.extf %0 : vector<32x128xbf16> to vector<32x128xf32>
    %c0_1 = arith.constant 0 : index
    %c0_2 = arith.constant 0 : index
    %2 = vector.load %arg2[%c0_1, %c0_2] : memref<1x128xf32, #tpu.memory_space<vmem>>, vector<1x128xf32>
    %3 = vector.broadcast %2 : vector<1x128xf32> to vector<32x128xf32>
    %4 = arith.mulf %1, %3 : vector<32x128xf32>
    %c0_3 = arith.constant 0 : index
    %c0_4 = arith.constant 0 : index
    %5 = vector.load %arg3[%c0_3, %c0_4] : memref<1x128xf32, #tpu.memory_space<vmem>>, vector<1x128xf32>
    %6 = vector.broadcast %5 : vector<1x128xf32> to vector<32x128xf32>
    %7 = arith.addf %4, %6 : vector<32x128xf32>
    %cst = arith.constant 0.000000e+00 : f32
    %8 = vector.broadcast %cst : f32 to vector<32x128xf32>
    %9 = arith.maximumf %7, %8 : vector<32x128xf32>
    %10 = arith.truncf %9 : vector<32x128xf32> to vector<32x128xbf16>
    %cst_5 = arith.constant 0.000000e+00 : f32
    %11 = vector.broadcast %cst_5 : f32 to vector<1x128xf32>
    %c1 = arith.constant 1 : index
    %c0_6 = arith.constant 0 : index
    %c0_7 = arith.constant 0 : index
    %12 = vector.load %arg4[%c1, %c0_6, %c0_7] : memref<3x128x128xbf16, #tpu.memory_space<vmem>>, vector<1x128x128xbf16>
    %13 = vector.shape_cast %12 : vector<1x128x128xbf16> to vector<128x128xbf16>
    %cst_8 = arith.constant dense<0.000000e+00> : vector<32x128xf32>
    %14 = tpu.matmul %10, %13, %cst_8 {dimension_numbers = #tpu.dot_dimension_numbers<[1], [0], [0], [1], [0, 0, 1, 1], [], []>} : vector<32x128xbf16>, vector<128x128xbf16>, vector<32x128xf32> -> vector<32x128xf32>
    %c0_9 = arith.constant 0 : index
    %c0_10 = arith.constant 0 : index
    %c0_11 = arith.constant 0 : index
    %15 = vector.load %arg4[%c0_9, %c0_10, %c0_11] : memref<3x128x128xbf16, #tpu.memory_space<vmem>>, vector<1x128x128xbf16>
    %16 = vector.shape_cast %15 : vector<1x128x128xbf16> to vector<128x128xbf16>
    %cst_12 = arith.constant dense<0.000000e+00> : vector<32x128xf32>
    %17 = tpu.matmul %10, %16, %cst_12 {dimension_numbers = #tpu.dot_dimension_numbers<[1], [0], [0], [1], [0, 0, 1, 1], [], []>} : vector<32x128xbf16>, vector<128x128xbf16>, vector<32x128xf32> -> vector<32x128xf32>
    %18 = vector.extract_strided_slice %17 {offsets = [0, 0], sizes = [31, 128], strides = [1, 1]} : vector<32x128xf32> to vector<31x128xf32>
    %19 = tpu.concatenate %11, %18 in 0 : vector<1x128xf32>, vector<31x128xf32> -> vector<32x128xf32>
    %c2 = arith.constant 2 : index
    %c0_13 = arith.constant 0 : index
    %c0_14 = arith.constant 0 : index
    %20 = vector.load %arg4[%c2, %c0_13, %c0_14] : memref<3x128x128xbf16, #tpu.memory_space<vmem>>, vector<1x128x128xbf16>
    %21 = vector.shape_cast %20 : vector<1x128x128xbf16> to vector<128x128xbf16>
    %cst_15 = arith.constant dense<0.000000e+00> : vector<32x128xf32>
    %22 = tpu.matmul %10, %21, %cst_15 {dimension_numbers = #tpu.dot_dimension_numbers<[1], [0], [0], [1], [0, 0, 1, 1], [], []>} : vector<32x128xbf16>, vector<128x128xbf16>, vector<32x128xf32> -> vector<32x128xf32>
    %23 = vector.extract_strided_slice %22 {offsets = [1, 0], sizes = [31, 128], strides = [1, 1]} : vector<32x128xf32> to vector<31x128xf32>
    %24 = tpu.concatenate %23, %11 in 0 : vector<31x128xf32>, vector<1x128xf32> -> vector<32x128xf32>
    %25 = tpu.iota {dimensions = array<i32: 0>} : vector<32x1xi32>
    %c16_i32 = arith.constant 16 : i32
    %c0_i32 = arith.constant 0 : i32
    %26 = arith.cmpi eq, %c16_i32, %c0_i32 : i32
    %c1_i32 = arith.constant 1 : i32
    %27 = arith.select %26, %c1_i32, %c16_i32 : i32
    %28 = vector.broadcast %27 : i32 to vector<32x1xi32>
    %29 = arith.remsi %25, %28 : vector<32x1xi32>
    %c0_i32_16 = arith.constant 0 : i32
    %30 = vector.broadcast %c0_i32_16 : i32 to vector<32x1xi32>
    %31 = arith.cmpi ne, %29, %30 : vector<32x1xi32>
    %c0_i32_17 = arith.constant 0 : i32
    %32 = vector.broadcast %c0_i32_17 : i32 to vector<32x1xi32>
    %33 = arith.cmpi slt, %29, %32 : vector<32x1xi32>
    %c0_i32_18 = arith.constant 0 : i32
    %34 = arith.cmpi slt, %27, %c0_i32_18 : i32
    %35 = vector.broadcast %34 : i1 to vector<32x1xi1>
    %36 = vector.broadcast %35 : vector<32x1xi1> to vector<32x1xi1>
    %37 = arith.xori %33, %36 : vector<32x1xi1>
    %38 = arith.andi %37, %31 : vector<32x1xi1>
    %39 = vector.broadcast %27 : i32 to vector<32x1xi32>
    %40 = arith.addi %29, %39 : vector<32x1xi32>
    %41 = arith.select %38, %40, %29 : vector<32x1xi1>, vector<32x1xi32>
    %c0_i32_19 = arith.constant 0 : i32
    %42 = vector.broadcast %c0_i32_19 : i32 to vector<32x1xi32>
    %43 = arith.cmpi eq, %41, %42 : vector<32x1xi32>
    %cst_20 = arith.constant 0.000000e+00 : f32
    %44 = vector.shape_cast %43 : vector<32x1xi1> to vector<32x1xi1>
    %45 = vector.broadcast %44 : vector<32x1xi1> to vector<32x128xi1>
    %46 = vector.broadcast %cst_20 : f32 to vector<32x128xf32>
    %47 = arith.select %45, %46, %19 : vector<32x128xi1>, vector<32x128xf32>
    %c16_i32_21 = arith.constant 16 : i32
    %c0_i32_22 = arith.constant 0 : i32
    %48 = arith.cmpi eq, %c16_i32_21, %c0_i32_22 : i32
    %c1_i32_23 = arith.constant 1 : i32
    %49 = arith.select %48, %c1_i32_23, %c16_i32_21 : i32
    %50 = vector.broadcast %49 : i32 to vector<32x1xi32>
    %51 = arith.remsi %25, %50 : vector<32x1xi32>
    %c0_i32_24 = arith.constant 0 : i32
    %52 = vector.broadcast %c0_i32_24 : i32 to vector<32x1xi32>
    %53 = arith.cmpi ne, %51, %52 : vector<32x1xi32>
    %c0_i32_25 = arith.constant 0 : i32
    %54 = vector.broadcast %c0_i32_25 : i32 to vector<32x1xi32>
    %55 = arith.cmpi slt, %51, %54 : vector<32x1xi32>
    %c0_i32_26 = arith.constant 0 : i32
    %56 = arith.cmpi slt, %49, %c0_i32_26 : i32
    %57 = vector.broadcast %56 : i1 to vector<32x1xi1>
    %58 = vector.broadcast %57 : vector<32x1xi1> to vector<32x1xi1>
    %59 = arith.xori %55, %58 : vector<32x1xi1>
    %60 = arith.andi %59, %53 : vector<32x1xi1>
    %61 = vector.broadcast %49 : i32 to vector<32x1xi32>
    %62 = arith.addi %51, %61 : vector<32x1xi32>
    %63 = arith.select %60, %62, %51 : vector<32x1xi1>, vector<32x1xi32>
    %c15_i32 = arith.constant 15 : i32
    %64 = vector.broadcast %c15_i32 : i32 to vector<32x1xi32>
    %65 = arith.cmpi eq, %63, %64 : vector<32x1xi32>
    %cst_27 = arith.constant 0.000000e+00 : f32
    %66 = vector.shape_cast %65 : vector<32x1xi1> to vector<32x1xi1>
    %67 = vector.broadcast %66 : vector<32x1xi1> to vector<32x128xi1>
    %68 = vector.broadcast %cst_27 : f32 to vector<32x128xf32>
    %69 = arith.select %67, %68, %24 : vector<32x128xi1>, vector<32x128xf32>
    %70 = arith.addf %14, %47 : vector<32x128xf32>
    %71 = arith.addf %70, %69 : vector<32x128xf32>
    %72 = arith.truncf %71 : vector<32x128xf32> to vector<32x128xbf16>
    %c0_28 = arith.constant 0 : index
    %c0_29 = arith.constant 0 : index
    %73 = vector.load %arg5[%c0_28, %c0_29] : memref<32x128xbf16, #tpu.memory_space<vmem>>, vector<32x128xbf16>
    tpu.vector_store %arg5[%c0_28, %c0_29], %72 {strides = array<i32>} : memref<32x128xbf16, #tpu.memory_space<vmem>>, vector<32x128xbf16>,
    %74 = arith.extf %72 : vector<32x128xbf16> to vector<32x128xf32>
    %cst_30 = arith.constant dense<0.000000e+00> : vector<128xf32>
    %75 = vector.multi_reduction <add>, %74, %cst_30 [0] : vector<32x128xf32> to vector<128xf32>
    %76 = vector.shape_cast %75 : vector<128xf32> to vector<1x128xf32>
    %c0_31 = arith.constant 0 : index
    %c0_32 = arith.constant 0 : index
    %c0_33 = arith.constant 0 : index
    %77 = vector.load %arg6[%c0_31, %c0_32, %c0_33] : memref<1x1x128xf32, #tpu.memory_space<vmem>>, vector<1x1x128xf32>
    %78 = vector.shape_cast %77 : vector<1x1x128xf32> to vector<1x128xf32>
    %79 = vector.shape_cast %76 : vector<1x128xf32> to vector<1x1x128xf32>
    tpu.vector_store %arg6[%c0_31, %c0_32, %c0_33], %79 {strides = array<i32>} : memref<1x1x128xf32, #tpu.memory_space<vmem>>, vector<1x1x128xf32>,
    %80 = arith.mulf %74, %74 : vector<32x128xf32>
    %cst_34 = arith.constant dense<0.000000e+00> : vector<128xf32>
    %81 = vector.multi_reduction <add>, %80, %cst_34 [0] : vector<32x128xf32> to vector<128xf32>
    %82 = vector.shape_cast %81 : vector<128xf32> to vector<1x128xf32>
    %c0_35 = arith.constant 0 : index
    %c0_36 = arith.constant 0 : index
    %c0_37 = arith.constant 0 : index
    %83 = vector.load %arg7[%c0_35, %c0_36, %c0_37] : memref<1x1x128xf32, #tpu.memory_space<vmem>>, vector<1x1x128xf32>
    %84 = vector.shape_cast %83 : vector<1x1x128xf32> to vector<1x128xf32>
    %85 = vector.shape_cast %82 : vector<1x128xf32> to vector<1x1x128xf32>
    tpu.vector_store %arg7[%c0_35, %c0_36, %c0_37], %85 {strides = array<i32>} : memref<1x1x128xf32, #tpu.memory_space<vmem>>, vector<1x1x128xf32>,
    return
  }
  func.func @transform_0(%arg0: i32) -> (i32, i32) {
    %c0_i32 = arith.constant 0 : i32
    %c0_i32_0 = arith.constant 0 : i32
    return %arg0, %c0_i32 : i32, i32
  }
  func.func @transform_1(%arg0: i32) -> (i32, i32) {
    %c0_i32 = arith.constant 0 : i32
    %c0_i32_0 = arith.constant 0 : i32
    %c0_i32_1 = arith.constant 0 : i32
    return %c0_i32, %c0_i32_0 : i32, i32
  }
  func.func @transform_2(%arg0: i32) -> (i32, i32) {
    %c0_i32 = arith.constant 0 : i32
    %c0_i32_0 = arith.constant 0 : i32
    %c0_i32_1 = arith.constant 0 : i32
    return %c0_i32, %c0_i32_0 : i32, i32
  }
  func.func @transform_3(%arg0: i32) -> (i32, i32, i32) {
    %c0_i32 = arith.constant 0 : i32
    %c0_i32_0 = arith.constant 0 : i32
    %c0_i32_1 = arith.constant 0 : i32
    %c0_i32_2 = arith.constant 0 : i32
    return %c0_i32, %c0_i32_0, %c0_i32_1 : i32, i32, i32
  }
  func.func @transform_4(%arg0: i32) -> (i32, i32) {
    %c0_i32 = arith.constant 0 : i32
    %c0_i32_0 = arith.constant 0 : i32
    return %arg0, %c0_i32 : i32, i32
  }
  func.func @transform_5(%arg0: i32) -> (i32, i32, i32) {
    %c0_i32 = arith.constant 0 : i32
    %c0_i32_0 = arith.constant 0 : i32
    %c0_i32_1 = arith.constant 0 : i32
    return %arg0, %c0_i32, %c0_i32_0 : i32, i32, i32
  }
  func.func @transform_6(%arg0: i32) -> (i32, i32, i32) {
    %c0_i32 = arith.constant 0 : i32
    %c0_i32_0 = arith.constant 0 : i32
    %c0_i32_1 = arith.constant 0 : i32
    return %arg0, %c0_i32, %c0_i32_0 : i32, i32, i32
  }
}

module attributes {stable_mosaic.version = 11 : i64} {
  func.func @_bnrelu_kernel(%arg0: i32, %arg1: memref<32x128xbf16, #tpu.memory_space<vmem>>, %arg2: memref<1x128xf32, #tpu.memory_space<vmem>>, %arg3: memref<1x128xf32, #tpu.memory_space<vmem>>, %arg4: memref<32x128xf32, #tpu.memory_space<vmem>>) attributes {dimension_semantics = [#tpu.dimension_semantics<parallel>], iteration_bounds = array<i64: 1>, scalar_prefetch = 0 : i64, scratch_operands = 0 : i64, tpu.core_type = #tpu.core_type<tc>, window_params = [{transform_indices = @transform_0, window_bounds = array<i64: 32, 128>}, {pipeline_mode = #tpu.pipeline_mode<synchronous>, transform_indices = @transform_1, window_bounds = array<i64: 1, 128>}, {pipeline_mode = #tpu.pipeline_mode<synchronous>, transform_indices = @transform_2, window_bounds = array<i64: 1, 128>}, {transform_indices = @transform_3, window_bounds = array<i64: 32, 128>}]} {
    %c0 = arith.constant 0 : index
    %c0_0 = arith.constant 0 : index
    %0 = vector.load %arg1[%c0, %c0_0] : memref<32x128xbf16, #tpu.memory_space<vmem>>, vector<32x128xbf16>
    %1 = arith.extf %0 : vector<32x128xbf16> to vector<32x128xf32>
    %c0_1 = arith.constant 0 : index
    %c0_2 = arith.constant 0 : index
    %2 = vector.load %arg2[%c0_1, %c0_2] : memref<1x128xf32, #tpu.memory_space<vmem>>, vector<1x128xf32>
    %3 = vector.broadcast %2 : vector<1x128xf32> to vector<32x128xf32>
    %4 = arith.mulf %1, %3 : vector<32x128xf32>
    %c0_3 = arith.constant 0 : index
    %c0_4 = arith.constant 0 : index
    %5 = vector.load %arg3[%c0_3, %c0_4] : memref<1x128xf32, #tpu.memory_space<vmem>>, vector<1x128xf32>
    %6 = vector.broadcast %5 : vector<1x128xf32> to vector<32x128xf32>
    %7 = arith.addf %4, %6 : vector<32x128xf32>
    %cst = arith.constant 0.000000e+00 : f32
    %8 = vector.broadcast %cst : f32 to vector<32x128xf32>
    %9 = arith.maximumf %7, %8 : vector<32x128xf32>
    %c0_5 = arith.constant 0 : index
    %c0_6 = arith.constant 0 : index
    %10 = vector.load %arg4[%c0_5, %c0_6] : memref<32x128xf32, #tpu.memory_space<vmem>>, vector<32x128xf32>
    tpu.vector_store %arg4[%c0_5, %c0_6], %9 {strides = array<i32>} : memref<32x128xf32, #tpu.memory_space<vmem>>, vector<32x128xf32>,
    return
  }
  func.func @transform_0(%arg0: i32) -> (i32, i32) {
    %c0_i32 = arith.constant 0 : i32
    %c0_i32_0 = arith.constant 0 : i32
    return %arg0, %c0_i32 : i32, i32
  }
  func.func @transform_1(%arg0: i32) -> (i32, i32) {
    %c0_i32 = arith.constant 0 : i32
    %c0_i32_0 = arith.constant 0 : i32
    %c0_i32_1 = arith.constant 0 : i32
    return %c0_i32, %c0_i32_0 : i32, i32
  }
  func.func @transform_2(%arg0: i32) -> (i32, i32) {
    %c0_i32 = arith.constant 0 : i32
    %c0_i32_0 = arith.constant 0 : i32
    %c0_i32_1 = arith.constant 0 : i32
    return %c0_i32, %c0_i32_0 : i32, i32
  }
  func.func @transform_3(%arg0: i32) -> (i32, i32) {
    %c0_i32 = arith.constant 0 : i32
    %c0_i32_0 = arith.constant 0 : i32
    return %arg0, %c0_i32 : i32, i32
  }
}

</mosaic_0001>

<bundles_post_ra>
// kernel: tile.28
= control target key start
LH: loop header
LB: loop body
LE: loop exit
PB: predicated region body
PF: predicated region fallthrough
CT: control target
= control target key end

     0   :  { %s28_s0 = inlined_call_operand.vmem [shape: f32[8], index: 0, kind: input, shape index: {}]   ;;  %s29_s1 = inlined_call_operand.vmem [shape: f32[16,8], index: 1, kind: output, shape index: {}]  }
   0x1   :  { %v4_v0 = vld [vmem:[%s28_s0] ss:$0 sm:$0xff] }
   0x2   :  { %5 = vst [vmem:[%s29_s1] sm:$0xff] %v4_v0  ;;  %8 = vst [vmem:[%s29_s1 + $0x8] sm:$0xff] %v4_v0 }

// kernel: tile.29
= control target key start
LH: loop header
LB: loop body
LE: loop exit
PB: predicated region body
PF: predicated region fallthrough
CT: control target
= control target key end

     0   :  { %s133_s10 = smov 120   ;;  %s134_s11 = smov 104   ;;  %vm3_vm0 = vcmask 64512   ;;  %vm9_vm1 = vcmask 1048512   ;;  %vm15_vm2 = vcmask 982912   ;;  %vm21_vm3 = vcmask 917312   ;;  %s209_s0 = inlined_call_operand.vmem [shape: f32[16,8], index: 0, kind: input, shape index: {}]   ;;  %s210_s1 = inlined_call_operand.vmem [shape: f32[1,128], index: 1, kind: output, shape index: {}]  }
   0x1   :  { %v103_v0 = vld [vmem:[%s209_s0 + $0xf] sm:$0x1]   ;;  %v105_v1 = vld [vmem:[%s209_s0 + $0xd] sm:$0x1]   ;;  %v104_v2 = vld [vmem:[%s209_s0 + $0xe] sm:$0x1]  }
   0x2   :  { %7 = vrot.lane.b32.xlu0 %v103_v0, %s133_s10  ;;  %19 = vrot.lane.b32.xlu1 %v105_v1, %s134_s11  ;;  %v106_v3 = vld [vmem:[%s209_s0 + $0xc] sm:$0x1]   ;;  %s135_s16 = smov 112   ;;  %s136_s17 = smov 96   ;;  %v107_v4 = vld [vmem:[%s209_s0 + $0xb] sm:$0x1]  }
   0x3   :  { %v108_v5 = vld [vmem:[%s209_s0 + $0xa] sm:$0x1]   ;;  %v2_v6 = vld [vmem:[%s209_s0] sm:$0x1]   ;;  %s137_s24 = smov 88   ;;  %s138_s25 = smov 80  }
   0x4   :  { %4 = vst.msk [vmem:[#allocation0] sm:$0x1] %vm3_vm0, %v2_v6   ;;  %v109_v7 = vld [vmem:[%s209_s0 + $0x9] sm:$0x1]   ;;  %v110_v8 = vld [vmem:[%s209_s0 + $0x8] sm:$0x1]  }
   0x5   :  { %s139_s30 = smov 72   ;;  %s140_s2 = smov 64   ;;  %v111_v9 = vld [vmem:[%s209_s0 + $0x7] sm:$0x1]   ;;  %v112_v10 = vld [vmem:[%s209_s0 + $0x6] sm:$0x1]  }
   0x6   :  { %13 = vrot.lane.b32.xlu0 %v104_v2, %s135_s16  ;;  %25 = vrot.lane.b32.xlu1 %v106_v3, %s136_s17  ;;  %s141_s7 = smov 56   ;;  %s142_s8 = smov 48   ;;  %v113_v11 = vld [vmem:[%s209_s0 + $0x5] sm:$0x1]   ;;  %v114_v12 = vld [vmem:[%s209_s0 + $0x4] sm:$0x1]  }
   0x7   :  { %s143_s13 = smov 40   ;;  %s144_s14 = smov 32   ;;  %v115_v13 = vld [vmem:[%s209_s0 + $0x3] sm:$0x1]   ;;  %v116_v14 = vld [vmem:[%s209_s0 + $0x2] sm:$0x1]  }
   0x8   :  { %s145_s19 = smov 24   ;;  %s146_s20 = smov 16   ;;  %v117_v15 = vld [vmem:[%s209_s0 + $0x1] sm:$0x1]   ;;  %vm27_vm4 = vcmask 851712   ;;  %vm33_vm5 = vcmask 786112  }
   0x9   :  { %s147_s0 = smov 8   ;;  %vm39_vm6 = vcmask 720512   ;;  %vm45_vm7 = vcmask 654912   ;;  %vm51_vm8 = vcmask 589312   ;;  %vm57_vm9 = vcmask 523712  }
   0xa   :  { %31 = vrot.lane.b32.xlu0 %v107_v4, %s137_s24  ;;  %37 = vrot.lane.b32.xlu1 %v108_v5, %s138_s25  ;;  %vm63_vm10 = vcmask 458112   ;;  %vm69_vm11 = vcmask 392512   ;;  %vm75_vm12 = vcmask 326912   ;;  %vm81_vm13 = vcmask 261312  }
   0xb   :  { %vm87_vm14 = vcmask 195712   ;;  %vm93_vm15 = vcmask 130112  }
   0xe   :  { %43 = vrot.lane.b32.xlu0 %v109_v7, %s139_s30  ;;  %49 = vrot.lane.b32.xlu1 %v110_v8, %s140_s2 }
  0x12   :  { %55 = vrot.lane.b32.xlu0 %v111_v9, %s141_s7  ;;  %61 = vrot.lane.b32.xlu1 %v112_v10, %s142_s8 }
  0x16   :  { %67 = vrot.lane.b32.xlu0 %v113_v11, %s143_s13  ;;  %73 = vrot.lane.b32.xlu1 %v114_v12, %s144_s14 }
  0x1a   :  { %79 = vrot.lane.b32.xlu0 %v115_v13, %s145_s19  ;;  %85 = vrot.lane.b32.xlu1 %v116_v14, %s146_s20 }
  0x1e   :  { %91 = vrot.lane.b32.xlu0 %v117_v15, %s147_s0 }
  0x74   :  { %v8_v16 = vpop.permute.xlu0 %7   ;;  %v20_v17 = vpop.permute.xlu1 %19  }
  0x75   :  { %10 = vst.msk [vmem:[#allocation0] sm:$0x1] %vm9_vm1, %v8_v16  }
  0x78   :  { %v14_v18 = vpop.permute.xlu0 %13   ;;  %v26_v19 = vpop.permute.xlu1 %25  }
  0x79   :  { %16 = vst.msk [vmem:[#allocation0] sm:$0x1] %vm15_vm2, %v14_v18  }
  0x7a   :  { %22 = vst.msk [vmem:[#allocation0] sm:$0x1] %vm21_vm3, %v20_v17  }
  0x7b   :  { %28 = vst.msk [vmem:[#allocation0] sm:$0x1] %vm27_vm4, %v26_v19  }
  0x7c   :  { %v32_v20 = vpop.permute.xlu0 %31   ;;  %v38_v21 = vpop.permute.xlu1 %37  }
  0x7d   :  { %34 = vst.msk [vmem:[#allocation0] sm:$0x1] %vm33_vm5, %v32_v20  }
  0x7e   :  { %40 = vst.msk [vmem:[#allocation0] sm:$0x1] %vm39_vm6, %v38_v21  }
  0x80   :  { %v44_v22 = vpop.permute.xlu0 %43   ;;  %v50_v23 = vpop.permute.xlu1 %49  }
  0x81   :  { %46 = vst.msk [vmem:[#allocation0] sm:$0x1] %vm45_vm7, %v44_v22  }
  0x82   :  { %52 = vst.msk [vmem:[#allocation0] sm:$0x1] %vm51_vm8, %v50_v23  }
  0x84   :  { %v56_v24 = vpop.permute.xlu0 %55   ;;  %v62_v25 = vpop.permute.xlu1 %61  }
  0x85   :  { %58 = vst.msk [vmem:[#allocation0] sm:$0x1] %vm57_vm9, %v56_v24  }
  0x86   :  { %64 = vst.msk [vmem:[#allocation0] sm:$0x1] %vm63_vm10, %v62_v25  }
  0x88   :  { %v68_v26 = vpop.permute.xlu0 %67   ;;  %v74_v27 = vpop.permute.xlu1 %73  }
  0x89   :  { %70 = vst.msk [vmem:[#allocation0] sm:$0x1] %vm69_vm11, %v68_v26  }
  0x8a   :  { %76 = vst.msk [vmem:[#allocation0] sm:$0x1] %vm75_vm12, %v74_v27  }
  0x8c   :  { %v80_v28 = vpop.permute.xlu0 %79   ;;  %v86_v29 = vpop.permute.xlu1 %85  }
  0x8d   :  { %82 = vst.msk [vmem:[#allocation0] sm:$0x1] %vm81_vm13, %v80_v28  }
  0x8e   :  { %88 = vst.msk [vmem:[#allocation0] sm:$0x1] %vm87_vm14, %v86_v29  }
  0x90   :  { %v92_v30 = vpop.permute.xlu0 %91  }
  0x91   :  { %94 = vst.msk [vmem:[#allocation0] sm:$0x1] %vm93_vm15, %v92_v30  }
  0x98   :  { %v99_v31 = vld [vmem:[#allocation0] sm:$0x1] }
  0x99   :  { %102 = vst [vmem:[%s210_s1] sm:$0x1] %v99_v31 }

// kernel: double_conv.3
= control target key start
LH: loop header
LB: loop body
LE: loop exit
PB: predicated region body
PF: predicated region fallthrough
CT: control target
= control target key end

     0   :  { %v309_v28 = vlaneseq  ;;  %vm165_vm0 = vcmask 1040384   ;;  %vm296_vm2 = vcmask 1046528   ;;  %s871_s1 = inlined_call_operand.vmem [shape: bf16[3,128,128], index: 1, kind: input, shape index: {}]   ;;  %s872_s0 = inlined_call_operand.vmem [shape: bf16[32,128], index: 0, kind: input, shape index: {}]   ;;  %s873_s2 = inlined_call_operand.vmem [shape: bf16[32,128], index: 2, kind: output, shape index: {0}]   ;;  %s874_s3 = inlined_call_operand.vmem [shape: f32[1,1,128], index: 3, kind: output, shape index: {1}]   ;;  %s875_s4 = inlined_call_operand.vmem [shape: f32[1,1,128], index: 4, kind: output, shape index: {2}]  }
   0x1   :  { %v722_v0 = vld [vmem:[%s871_s1 + $0x38] sm:$0xff]   ;;  %v723_v1 = vld [vmem:[%s871_s1 + $0x30] sm:$0xff]   ;;  %v724_v2 = vld [vmem:[%s871_s1 + $0x28] sm:$0xff]  }
   0x2   :  { %662 = vmatprep.subr.bf16.mxu0 %v722_v0  ;;  %v729_v3 = vld [vmem:[%s871_s1 + $0xb8] sm:$0xff]   ;;  %v725_v4 = vld [vmem:[%s871_s1 + $0x20] sm:$0xff]   ;;  %v731_v5 = vld [vmem:[%s871_s1 + $0xb0] sm:$0xff]   ;;  %v310_v31 = vshrl.u32 %v309_v28, 7 }
   0x3   :  { %663 = vmatpush3.bf16.msra.mxu0 %v722_v0  ;;  %682 = vmatprep.subr.bf16.mxu1 %v729_v3  ;;  %v732_v6 = vld [vmem:[%s872_s0] sm:$0xff]   ;;  %v726_v7 = vld [vmem:[%s871_s1 + $0x18] sm:$0xff]   ;;  %v734_v8 = vld [vmem:[%s871_s1 + $0xa8] sm:$0xff]  }
   0x4   :  { %664 = vmatprep.subr.bf16.mxu0 %v723_v1  ;;  %683 = vmatpush3.bf16.msra.mxu1 %v729_v3  ;;  %v736_v9 = vld [vmem:[%s871_s1 + $0xa0] sm:$0xff]   ;;  %v727_v10 = vld [vmem:[%s871_s1 + $0x10] sm:$0xff]   ;;  %v738_v11 = vld [vmem:[%s871_s1 + $0x98] sm:$0xff]   ;;  %v312_v33 = vadd.s32 16, %v310_v31  ;;  %v313_v38 = vadd.s32 24, %v310_v31  ;;  %v318_v41 = vand.u32 15, %v310_v31 }
   0x5   :  { %684 = vmatprep.subr.bf16.mxu1 %v731_v5  ;;  %678 = vmatprep.mubr.bf16.mxu0 %v732_v6  ;;  %v728_v12 = vld [vmem:[%s871_s1 + $0x8] sm:$0xff]   ;;  %v740_v13 = vld [vmem:[%s871_s1 + $0x90] sm:$0xff]   ;;  %v730_v14 = vld [vmem:[%s871_s1] sm:$0xff]   ;;  %v311_v42 = vadd.s32 8, %v310_v31 }
   0x6   :  { %698 = vmatprep.mubr.bf16.mxu1 %v732_v6  ;;  %v742_v15 = vld [vmem:[%s871_s1 + $0x88] sm:$0xff]   ;;  %v735_v16 = vld [vmem:[%s871_s1 + $0x78] sm:$0xff]   ;;  %v744_v18 = vld [vmem:[%s871_s1 + $0x80] sm:$0xff]   ;;  %v332_v37 = vand.u32 15, %v312_v33  ;;  %v339_v46 = vand.u32 15, %v313_v38  ;;  %vm362_vm3 = vcmp.eq.s32.totalorder %v318_v41, 0 }
   0x7   :  { %665 = vmatpush3.bf16.msra.mxu0 %v723_v1  ;;  %v733_v17 = vld [vmem:[%s872_s0 + $0x8] sm:$0xff]   ;;  %v737_v19 = vld [vmem:[%s871_s1 + $0x70] sm:$0xff]   ;;  %v741_v21 = vld [vmem:[%s871_s1 + $0x60] sm:$0xff]   ;;  %v325_v52 = vand.u32 15, %v311_v42 }
   0x8   :  { %666 = vmatprep.subr.bf16.mxu0 %v724_v2  ;;  %685 = vmatpush3.bf16.msra.mxu1 %v731_v5  ;;  %v739_v20 = vld [vmem:[%s871_s1 + $0x68] sm:$0xff]   ;;  %v743_v22 = vld [vmem:[%s871_s1 + $0x58] sm:$0xff]   ;;  %v745_v23 = vld [vmem:[%s871_s1 + $0x50] sm:$0xff]   ;;  %vm364_vm1 = vcmp.eq.s32.totalorder %v332_v37, 0  ;;  %vm381_vm4 = vcmp.eq.s32.totalorder %v339_v46, 15 }
   0x9   :  { %686 = vmatprep.subr.bf16.mxu1 %v734_v8  ;;  %v746_v24 = vld [vmem:[%s871_s1 + $0x48] sm:$0xff]   ;;  %v747_v25 = vld [vmem:[%s871_s1 + $0x40] sm:$0xff]   ;;  %vm379_vm5 = vcmp.eq.s32.totalorder %v325_v52, 15 }
   0xb   :  { %667 = vmatpush3.bf16.msra.mxu0 %v724_v2 }
   0xc   :  { %668 = vmatprep.subr.bf16.mxu0 %v725_v4  ;;  %687 = vmatpush3.bf16.msra.mxu1 %v734_v8 }
   0xd   :  { %688 = vmatprep.subr.bf16.mxu1 %v736_v9 }
   0xf   :  { %669 = vmatpush3.bf16.msra.mxu0 %v725_v4 }
  0x10   :  { %670 = vmatprep.subr.bf16.mxu0 %v726_v7  ;;  %689 = vmatpush3.bf16.msra.mxu1 %v736_v9 }
  0x11   :  { %690 = vmatprep.subr.bf16.mxu1 %v738_v11 }
  0x13   :  { %671 = vmatpush3.bf16.msra.mxu0 %v726_v7 }
  0x14   :  { %672 = vmatprep.subr.bf16.mxu0 %v727_v10  ;;  %691 = vmatpush3.bf16.msra.mxu1 %v738_v11 }
  0x15   :  { %692 = vmatprep.subr.bf16.mxu1 %v740_v13 }
  0x17   :  { %673 = vmatpush3.bf16.msra.mxu0 %v727_v10 }
  0x18   :  { %674 = vmatprep.subr.bf16.mxu0 %v728_v12  ;;  %693 = vmatpush3.bf16.msra.mxu1 %v740_v13 }
  0x19   :  { %694 = vmatprep.subr.bf16.mxu1 %v742_v15 }
  0x1b   :  { %675 = vmatpush3.bf16.msra.mxu0 %v728_v12 }
  0x1c   :  { %676 = vmatprep.subr.bf16.mxu0 %v730_v14  ;;  %695 = vmatpush3.bf16.msra.mxu1 %v742_v15 }
  0x1d   :  { %696 = vmatprep.subr.bf16.mxu1 %v744_v18 }
  0x1f   :  { %677 = vmatpush3.bf16.msra.mxu0 %v730_v14 }
  0x20   :  { %702 = vmatprep.subr.bf16.mxu0 %v735_v16  ;;  %697 = vmatpush3.bf16.msra.mxu1 %v744_v18 }
  0x22   :  { %679 = vmatmul.mubr.bf16.vlgmr.msra.gmra.mxu0 %v733_v17 }
  0x23   :  { %703 = vmatpush3.bf16.msra.mxu0 %v735_v16  ;;  %718 = vmatprep.mubr.bf16.mxu0 %v732_v6 }
  0x24   :  { %704 = vmatprep.subr.bf16.mxu0 %v737_v19  ;;  %699 = vmatmul.mubr.bf16.vlgmr.msra.gmra.mxu1 %v733_v17 }
  0x27   :  { %705 = vmatpush3.bf16.msra.mxu0 %v737_v19 }
  0x28   :  { %706 = vmatprep.subr.bf16.mxu0 %v739_v20 }
  0x2b   :  { %707 = vmatpush3.bf16.msra.mxu0 %v739_v20 }
  0x2c   :  { %708 = vmatprep.subr.bf16.mxu0 %v741_v21 }
  0x2f   :  { %709 = vmatpush3.bf16.msra.mxu0 %v741_v21 }
  0x30   :  { %710 = vmatprep.subr.bf16.mxu0 %v743_v22 }
  0x33   :  { %711 = vmatpush3.bf16.msra.mxu0 %v743_v22 }
  0x34   :  { %712 = vmatprep.subr.bf16.mxu0 %v745_v23 }
  0x37   :  { %713 = vmatpush3.bf16.msra.mxu0 %v745_v23 }
  0x38   :  { %714 = vmatprep.subr.bf16.mxu0 %v746_v24 }
  0x3b   :  { %715 = vmatpush3.bf16.msra.mxu0 %v746_v24 }
  0x3c   :  { %716 = vmatprep.subr.bf16.mxu0 %v747_v25 }
  0x3f   :  { %717 = vmatpush3.bf16.msra.mxu0 %v747_v25 }
  0x42   :  { %719 = vmatmul.mubr.bf16.vlgmr.msra.gmra.mxu0 %v733_v17 }
  0xe2   :  { %v680_v26 = vpop.f32.mrf.mxu0 }
  0xe3   :  { %v169_v39 = vrot.slane %v680_v26, 7 }
  0xe4   :  { %v146_v27 = vpop.f32.mrf.mxu0  ;;  %v700_v29 = vpop.f32.mrf.mxu1 }
  0xe5   :  { %v166_v40 = vrot.slane %v146_v27, 7  ;;  %v300_v48 = vrot.slane %v700_v29, 1 }
  0xe6   :  { %v681_v30 = vpop.f32.mrf.mxu0  ;;  %v277_v32 = vpop.f32.mrf.mxu1 }
  0xe7   :  { %v171_v47 = vrot.slane %v681_v30, 7  ;;  %v177_v51 = vsel %vm165_vm0, 0.0, %v166_v40  ;;  %v297_v57 = vrot.slane %v277_v32, 1 }
  0xe8   :  { %v149_v34 = vpop.f32.mrf.mxu0  ;;  %v701_v35 = vpop.f32.mrf.mxu1  ;;  %v374_v59 = vsel %vm362_vm3, 0.0, %v177_v51 }
  0xe9   :  { %v167_v36 = vrot.slane %v149_v34, 7  ;;  %v302_v44 = vrot.slane %v701_v35, 1  ;;  %v172_v60 = vsel %vm165_vm0, %v169_v39, %v171_v47 }
  0xea   :  { %v280_v43 = vpop.f32.mrf.mxu1 }
  0xeb   :  { %v170_v45 = vsel %vm165_vm0, %v167_v36, %v169_v39  ;;  %v298_v50 = vrot.slane %v280_v43, 1  ;;  %v308_v55 = vsel %vm296_vm2, %v302_v44, 0.0  ;;  %v303_v58 = vsel %vm296_vm2, %v300_v48, %v302_v44 }
  0xec   :  { %v376_v53 = vsel %vm364_vm1, 0.0, %v170_v45  ;;  %v393_v1 = vsel %vm381_vm4, 0.0, %v308_v55  ;;  %v168_v2 = vsel %vm165_vm0, %v166_v40, %v167_v36 }
  0xed   :  { %v301_v62 = vsel %vm296_vm2, %v298_v50, %v300_v48  ;;  %v299_v7 = vsel %vm296_vm2, %v297_v57, %v298_v50 }
  0xee   :  { %v391_v8 = vsel %vm379_vm5, 0.0, %v301_v62 }
 0x102   :  { %v720_v49 = vpop.f32.mrf.mxu0 }
 0x103   :  { %v485_v56 = vadd.f32 %v720_v49, %v376_v53 }
 0x104   :  { %v476_v54 = vpop.f32.mrf.mxu0 }
 0x105   :  { %v477_v63 = vadd.f32 %v476_v54, %v374_v59  ;;  %v493_v4 = vadd.f32 %v485_v56, %v303_v58 }
 0x106   :  { %v721_v61 = vpop.f32.mrf.mxu0 }
 0x107   :  { %v488_v0 = vadd.f32 %v721_v61, %v172_v60  ;;  %v491_v9 = vadd.f32 %v477_v63, %v299_v7 }
 0x108   :  { %v479_v3 = vpop.f32.mrf.mxu0 }
 0x109   :  { %v494_v5 = vadd.f32 %v488_v0, %v393_v1  ;;  %v480_v6 = vadd.f32 %v479_v3, %v168_v2 }
 0x10b   :  { %v496_v10 = vpack.c.bf16 %v494_v5, %v493_v4  ;;  %v492_v11 = vadd.f32 %v480_v6, %v391_v8 }
 0x10d   :  { %631 = vst [vmem:[%s873_s2 + $0x8] sm:$0xff] %v496_v10   ;;  %v495_v12 = vpack.c.bf16 %v492_v11, %v491_v9  ;;  %v517_v13 = vunpack.c.l.bf16 %v496_v10  ;;  %v518_v16 = vunpack.c.h.bf16 %v496_v10 }
 0x10f   :  { %625 = vst [vmem:[%s873_s2] sm:$0xff] %v495_v12   ;;  %v515_v14 = vunpack.c.l.bf16 %v495_v12  ;;  %v516_v15 = vunpack.c.h.bf16 %v495_v12  ;;  %v531_v20 = vmul.f32 %v517_v13, %v517_v13  ;;  %v532_v23 = vmul.f32 %v518_v16, %v518_v16 }
 0x111   :  { %v519_v17 = vadd.f32 %v516_v15, %v515_v14  ;;  %v529_v18 = vmul.f32 %v515_v14, %v515_v14  ;;  %v530_v19 = vmul.f32 %v516_v15, %v516_v15 }
 0x113   :  { %v520_v21 = vadd.f32 %v519_v17, %v517_v13  ;;  %v533_v22 = vadd.f32 %v530_v19, %v529_v18 }
 0x115   :  { %v521_v24 = vadd.f32 %v520_v21, %v518_v16  ;;  %v534_v25 = vadd.f32 %v533_v22, %v531_v20 }
 0x117   :  { %v522_v26 = vrot.slane %v521_v24, 4  ;;  %v535_v27 = vadd.f32 %v534_v25, %v532_v23 }
 0x119   :  { %v523_v28 = vadd.f32 %v522_v26, %v521_v24  ;;  %v536_v29 = vrot.slane %v535_v27, 4 }
 0x11b   :  { %v524_v30 = vrot.slane %v523_v28, 2  ;;  %v537_v31 = vadd.f32 %v536_v29, %v535_v27 }
 0x11d   :  { %v525_v32 = vadd.f32 %v524_v30, %v523_v28  ;;  %v538_v33 = vrot.slane %v537_v31, 2 }
 0x11f   :  { %v526_v34 = vrot.slane %v525_v32, 1  ;;  %v539_v35 = vadd.f32 %v538_v33, %v537_v31 }
 0x121   :  { %v527_v36 = vadd.f32 %v526_v34, %v525_v32  ;;  %v540_v37 = vrot.slane %v539_v35, 1 }
 0x123   :  { %528 = vst [vmem:[%s874_s3] sm:$0x1] %v527_v36  ;;  %v541_v38 = vadd.f32 %v540_v37, %v539_v35 }
 0x125   :  { %542 = vst [vmem:[%s875_s4] sm:$0x1] %v541_v38 }

// kernel: double_conv.4
= control target key start
LH: loop header
LB: loop body
LE: loop exit
PB: predicated region body
PF: predicated region fallthrough
CT: control target
= control target key end

     0   :  { %v335_v48 = vlaneseq  ;;  %vm191_vm0 = vcmask 1040384   ;;  %vm322_vm2 = vcmask 1046528   ;;  %s920_s3 = inlined_call_operand.vmem [shape: bf16[3,128,128], index: 3, kind: input, shape index: {}]   ;;  %s921_s0 = inlined_call_operand.vmem [shape: bf16[32,128], index: 0, kind: input, shape index: {}]   ;;  %s922_s1 = inlined_call_operand.vmem [shape: f32[1,128], index: 1, kind: input, shape index: {}]   ;;  %s923_s2 = inlined_call_operand.vmem [shape: f32[1,128], index: 2, kind: input, shape index: {}]   ;;  %s924_s4 = inlined_call_operand.vmem [shape: bf16[32,128], index: 4, kind: output, shape index: {0}]   ;;  %s925_s5 = inlined_call_operand.vmem [shape: f32[1,1,128], index: 5, kind: output, shape index: {1}]   ;;  %s926_s6 = inlined_call_operand.vmem [shape: f32[1,1,128], index: 6, kind: output, shape index: {2}]  }
   0x1   :  { %v757_v0 = vld [vmem:[%s920_s3 + $0x38] sm:$0xff]   ;;  %v758_v1 = vld [vmem:[%s920_s3 + $0x30] sm:$0xff]   ;;  %v759_v2 = vld [vmem:[%s920_s3 + $0x28] sm:$0xff]  }
   0x2   :  { %697 = vmatprep.subr.bf16.mxu0 %v757_v0  ;;  %v764_v3 = vld [vmem:[%s920_s3 + $0xb8] sm:$0xff]   ;;  %v760_v4 = vld [vmem:[%s920_s3 + $0x20] sm:$0xff]   ;;  %v766_v5 = vld [vmem:[%s920_s3 + $0xb0] sm:$0xff]   ;;  %v336_v51 = vshrl.u32 %v335_v48, 7 }
   0x3   :  { %698 = vmatpush3.bf16.msra.mxu0 %v757_v0  ;;  %717 = vmatprep.subr.bf16.mxu1 %v764_v3  ;;  %v761_v6 = vld [vmem:[%s920_s3 + $0x18] sm:$0xff]   ;;  %v648_v7 = vld [vmem:[%s921_s0] sm:$0xff]   ;;  %v665_v12 = vld [vmem:[%s921_s0 + $0x8] sm:$0xff]  }
   0x4   :  { %699 = vmatprep.subr.bf16.mxu0 %v758_v1  ;;  %718 = vmatpush3.bf16.msra.mxu1 %v764_v3  ;;  %v581_v8 = vld [vmem:[%s922_s1] ss:$0 sm:$0xff]  ;;  %v649_v10 = vunpack.c.l.bf16 %v648_v7  ;;  %v650_v11 = vunpack.c.h.bf16 %v648_v7  ;;  %v767_v13 = vld [vmem:[%s920_s3 + $0xa8] sm:$0xff]   ;;  %v653_v16 = vunpack.c.l.bf16 %v665_v12  ;;  %v654_v17 = vunpack.c.h.bf16 %v665_v12  ;;  %v762_v21 = vld [vmem:[%s920_s3 + $0x10] sm:$0xff]  }
   0x5   :  { %v582_v9 = vld [vmem:[%s923_s2] ss:$0 sm:$0xff]  ;;  %719 = vmatprep.subr.bf16.mxu1 %v766_v5  ;;  %v771_v27 = vld [vmem:[%s920_s3 + $0x98] sm:$0xff]   ;;  %v763_v28 = vld [vmem:[%s920_s3 + $0x8] sm:$0xff]   ;;  %v338_v53 = vadd.s32 16, %v336_v51  ;;  %v339_v58 = vadd.s32 24, %v336_v51 }
   0x6   :  { %v36_v14 = vmul.f32 %v649_v10, %v581_v8  ;;  %v37_v15 = vmul.f32 %v650_v11, %v581_v8  ;;  %v769_v20 = vld [vmem:[%s920_s3 + $0xa0] sm:$0xff]   ;;  %v38_v24 = vmul.f32 %v653_v16, %v581_v8  ;;  %v39_v25 = vmul.f32 %v654_v17, %v581_v8  ;;  %v773_v31 = vld [vmem:[%s920_s3 + $0x90] sm:$0xff]   ;;  %v775_v35 = vld [vmem:[%s920_s3 + $0x88] sm:$0xff]  }
   0x7   :  { %700 = vmatpush3.bf16.msra.mxu0 %v758_v1  ;;  %v765_v32 = vld [vmem:[%s920_s3] sm:$0xff]   ;;  %v768_v36 = vld [vmem:[%s920_s3 + $0x78] sm:$0xff]   ;;  %v770_v39 = vld [vmem:[%s920_s3 + $0x70] sm:$0xff]   ;;  %v358_v57 = vand.u32 15, %v338_v53  ;;  %v344_v61 = vand.u32 15, %v336_v51  ;;  %v337_v62 = vadd.s32 8, %v336_v51 }
   0x8   :  { %701 = vmatprep.subr.bf16.mxu0 %v759_v2  ;;  %720 = vmatpush3.bf16.msra.mxu1 %v766_v5  ;;  %v47_v18 = vadd.f32 %v582_v9, %v36_v14  ;;  %v48_v19 = vadd.f32 %v582_v9, %v37_v15  ;;  %v49_v29 = vadd.f32 %v582_v9, %v38_v24  ;;  %v777_v38 = vld [vmem:[%s920_s3 + $0x80] sm:$0xff]   ;;  %v772_v40 = vld [vmem:[%s920_s3 + $0x68] sm:$0xff]   ;;  %v776_v42 = vld [vmem:[%s920_s3 + $0x58] sm:$0xff]  }
   0x9   :  { %721 = vmatprep.subr.bf16.mxu1 %v767_v13  ;;  %v50_v30 = vadd.f32 %v582_v9, %v39_v25  ;;  %v774_v41 = vld [vmem:[%s920_s3 + $0x60] sm:$0xff]   ;;  %v778_v43 = vld [vmem:[%s920_s3 + $0x50] sm:$0xff]   ;;  %v779_v44 = vld [vmem:[%s920_s3 + $0x48] sm:$0xff]   ;;  %vm390_vm1 = vcmp.eq.s32.totalorder %v358_v57, 0  ;;  %vm388_vm3 = vcmp.eq.s32.totalorder %v344_v61, 0  ;;  %v351_v8 = vand.u32 15, %v337_v62 }
   0xa   :  { %v51_v22 = vmax.f32 %v47_v18, 0.0  ;;  %v52_v23 = vmax.f32 %v48_v19, 0.0  ;;  %v53_v33 = vmax.f32 %v49_v29, 0.0  ;;  %v780_v45 = vld [vmem:[%s920_s3 + $0x40] sm:$0xff]  }
   0xb   :  { %702 = vmatpush3.bf16.msra.mxu0 %v759_v2  ;;  %v54_v34 = vmax.f32 %v50_v30, 0.0  ;;  %v365_v2 = vand.u32 15, %v339_v58  ;;  %vm405_vm5 = vcmp.eq.s32.totalorder %v351_v8, 15 }
   0xc   :  { %703 = vmatprep.subr.bf16.mxu0 %v760_v4  ;;  %722 = vmatpush3.bf16.msra.mxu1 %v767_v13  ;;  %v55_v26 = vpack.c.bf16 %v52_v23, %v51_v22 }
   0xd   :  { %723 = vmatprep.subr.bf16.mxu1 %v769_v20  ;;  %v56_v37 = vpack.c.bf16 %v54_v34, %v53_v33  ;;  %vm407_vm4 = vcmp.eq.s32.totalorder %v365_v2, 15 }
   0xe   :  { %713 = vmatprep.mubr.bf16.mxu0 %v55_v26  ;;  %733 = vmatprep.mubr.bf16.mxu1 %v55_v26 }
   0xf   :  { %704 = vmatpush3.bf16.msra.mxu0 %v760_v4 }
  0x10   :  { %705 = vmatprep.subr.bf16.mxu0 %v761_v6  ;;  %724 = vmatpush3.bf16.msra.mxu1 %v769_v20 }
  0x11   :  { %725 = vmatprep.subr.bf16.mxu1 %v771_v27 }
  0x13   :  { %706 = vmatpush3.bf16.msra.mxu0 %v761_v6 }
  0x14   :  { %707 = vmatprep.subr.bf16.mxu0 %v762_v21  ;;  %726 = vmatpush3.bf16.msra.mxu1 %v771_v27 }
  0x15   :  { %727 = vmatprep.subr.bf16.mxu1 %v773_v31 }
  0x17   :  { %708 = vmatpush3.bf16.msra.mxu0 %v762_v21 }
  0x18   :  { %709 = vmatprep.subr.bf16.mxu0 %v763_v28  ;;  %728 = vmatpush3.bf16.msra.mxu1 %v773_v31 }
  0x19   :  { %729 = vmatprep.subr.bf16.mxu1 %v775_v35 }
  0x1b   :  { %710 = vmatpush3.bf16.msra.mxu0 %v763_v28 }
  0x1c   :  { %711 = vmatprep.subr.bf16.mxu0 %v765_v32  ;;  %730 = vmatpush3.bf16.msra.mxu1 %v775_v35 }
  0x1d   :  { %731 = vmatprep.subr.bf16.mxu1 %v777_v38 }
  0x1f   :  { %712 = vmatpush3.bf16.msra.mxu0 %v765_v32 }
  0x20   :  { %737 = vmatprep.subr.bf16.mxu0 %v768_v36  ;;  %732 = vmatpush3.bf16.msra.mxu1 %v777_v38 }
  0x22   :  { %714 = vmatmul.mubr.bf16.vlgmr.msra.gmra.mxu0 %v56_v37 }
  0x23   :  { %738 = vmatpush3.bf16.msra.mxu0 %v768_v36  ;;  %753 = vmatprep.mubr.bf16.mxu0 %v55_v26 }
  0x24   :  { %739 = vmatprep.subr.bf16.mxu0 %v770_v39  ;;  %734 = vmatmul.mubr.bf16.vlgmr.msra.gmra.mxu1 %v56_v37 }
  0x27   :  { %740 = vmatpush3.bf16.msra.mxu0 %v770_v39 }
  0x28   :  { %741 = vmatprep.subr.bf16.mxu0 %v772_v40 }
  0x2b   :  { %742 = vmatpush3.bf16.msra.mxu0 %v772_v40 }
  0x2c   :  { %743 = vmatprep.subr.bf16.mxu0 %v774_v41 }
  0x2f   :  { %744 = vmatpush3.bf16.msra.mxu0 %v774_v41 }
  0x30   :  { %745 = vmatprep.subr.bf16.mxu0 %v776_v42 }
  0x33   :  { %746 = vmatpush3.bf16.msra.mxu0 %v776_v42 }
  0x34   :  { %747 = vmatprep.subr.bf16.mxu0 %v778_v43 }
  0x37   :  { %748 = vmatpush3.bf16.msra.mxu0 %v778_v43 }
  0x38   :  { %749 = vmatprep.subr.bf16.mxu0 %v779_v44 }
  0x3b   :  { %750 = vmatpush3.bf16.msra.mxu0 %v779_v44 }
  0x3c   :  { %751 = vmatprep.subr.bf16.mxu0 %v780_v45 }
  0x3f   :  { %752 = vmatpush3.bf16.msra.mxu0 %v780_v45 }
  0x42   :  { %754 = vmatmul.mubr.bf16.vlgmr.msra.gmra.mxu0 %v56_v37 }
  0xe2   :  { %v715_v46 = vpop.f32.mrf.mxu0 }
  0xe3   :  { %v195_v59 = vrot.slane %v715_v46, 7 }
  0xe4   :  { %v172_v47 = vpop.f32.mrf.mxu0  ;;  %v735_v49 = vpop.f32.mrf.mxu1 }
  0xe5   :  { %v192_v60 = vrot.slane %v172_v47, 7  ;;  %v326_v4 = vrot.slane %v735_v49, 1 }
  0xe6   :  { %v716_v50 = vpop.f32.mrf.mxu0  ;;  %v303_v52 = vpop.f32.mrf.mxu1 }
  0xe7   :  { %v197_v3 = vrot.slane %v716_v50, 7  ;;  %v203_v7 = vsel %vm191_vm0, 0.0, %v192_v60  ;;  %v323_v13 = vrot.slane %v303_v52, 1 }
  0xe8   :  { %v175_v54 = vpop.f32.mrf.mxu0  ;;  %v736_v55 = vpop.f32.mrf.mxu1  ;;  %v400_v15 = vsel %vm388_vm3, 0.0, %v203_v7 }
  0xe9   :  { %v193_v56 = vrot.slane %v175_v54, 7  ;;  %v328_v0 = vrot.slane %v736_v55, 1  ;;  %v198_v16 = vsel %vm191_vm0, %v195_v59, %v197_v3 }
  0xea   :  { %v306_v63 = vpop.f32.mrf.mxu1 }
  0xeb   :  { %v196_v1 = vsel %vm191_vm0, %v193_v56, %v195_v59  ;;  %v324_v6 = vrot.slane %v306_v63, 1  ;;  %v334_v11 = vsel %vm322_vm2, %v328_v0, 0.0  ;;  %v329_v14 = vsel %vm322_vm2, %v326_v4, %v328_v0 }
  0xec   :  { %v402_v9 = vsel %vm390_vm1, 0.0, %v196_v1  ;;  %v419_v21 = vsel %vm407_vm4, 0.0, %v334_v11  ;;  %v194_v22 = vsel %vm191_vm0, %v192_v60, %v193_v56 }
  0xed   :  { %v327_v18 = vsel %vm322_vm2, %v324_v6, %v326_v4  ;;  %v325_v27 = vsel %vm322_vm2, %v323_v13, %v324_v6 }
  0xee   :  { %v417_v28 = vsel %vm405_vm5, 0.0, %v327_v18 }
 0x102   :  { %v755_v5 = vpop.f32.mrf.mxu0 }
 0x103   :  { %v511_v12 = vadd.f32 %v755_v5, %v402_v9 }
 0x104   :  { %v502_v10 = vpop.f32.mrf.mxu0 }
 0x105   :  { %v503_v19 = vadd.f32 %v502_v10, %v400_v15  ;;  %v519_v24 = vadd.f32 %v511_v12, %v329_v14 }
 0x106   :  { %v756_v17 = vpop.f32.mrf.mxu0 }
 0x107   :  { %v514_v20 = vadd.f32 %v756_v17, %v198_v16  ;;  %v517_v29 = vadd.f32 %v503_v19, %v325_v27 }
 0x108   :  { %v505_v23 = vpop.f32.mrf.mxu0 }
 0x109   :  { %v520_v25 = vadd.f32 %v514_v20, %v419_v21  ;;  %v506_v26 = vadd.f32 %v505_v23, %v194_v22 }
 0x10b   :  { %v522_v30 = vpack.c.bf16 %v520_v25, %v519_v24  ;;  %v518_v31 = vadd.f32 %v506_v26, %v417_v28 }
 0x10d   :  { %666 = vst [vmem:[%s924_s4 + $0x8] sm:$0xff] %v522_v30   ;;  %v521_v32 = vpack.c.bf16 %v518_v31, %v517_v29  ;;  %v543_v33 = vunpack.c.l.bf16 %v522_v30  ;;  %v544_v36 = vunpack.c.h.bf16 %v522_v30 }
 0x10f   :  { %659 = vst [vmem:[%s924_s4] sm:$0xff] %v521_v32   ;;  %v541_v34 = vunpack.c.l.bf16 %v521_v32  ;;  %v542_v35 = vunpack.c.h.bf16 %v521_v32  ;;  %v557_v40 = vmul.f32 %v543_v33, %v543_v33  ;;  %v558_v43 = vmul.f32 %v544_v36, %v544_v36 }
 0x111   :  { %v545_v37 = vadd.f32 %v542_v35, %v541_v34  ;;  %v555_v38 = vmul.f32 %v541_v34, %v541_v34  ;;  %v556_v39 = vmul.f32 %v542_v35, %v542_v35 }
 0x113   :  { %v546_v41 = vadd.f32 %v545_v37, %v543_v33  ;;  %v559_v42 = vadd.f32 %v556_v39, %v555_v38 }
 0x115   :  { %v547_v44 = vadd.f32 %v546_v41, %v544_v36  ;;  %v560_v45 = vadd.f32 %v559_v42, %v557_v40 }
 0x117   :  { %v548_v46 = vrot.slane %v547_v44, 4  ;;  %v561_v47 = vadd.f32 %v560_v45, %v558_v43 }
 0x119   :  { %v549_v48 = vadd.f32 %v548_v46, %v547_v44  ;;  %v562_v49 = vrot.slane %v561_v47, 4 }
 0x11b   :  { %v550_v50 = vrot.slane %v549_v48, 2  ;;  %v563_v51 = vadd.f32 %v562_v49, %v561_v47 }
 0x11d   :  { %v551_v52 = vadd.f32 %v550_v50, %v549_v48  ;;  %v564_v53 = vrot.slane %v563_v51, 2 }
 0x11f   :  { %v552_v54 = vrot.slane %v551_v52, 1  ;;  %v565_v55 = vadd.f32 %v564_v53, %v563_v51 }
 0x121   :  { %v553_v56 = vadd.f32 %v552_v54, %v551_v52  ;;  %v566_v57 = vrot.slane %v565_v55, 1 }
 0x123   :  { %554 = vst [vmem:[%s925_s5] sm:$0x1] %v553_v56  ;;  %v567_v58 = vadd.f32 %v566_v57, %v565_v55 }
 0x125   :  { %568 = vst [vmem:[%s926_s6] sm:$0x1] %v567_v58 }

// kernel: double_conv.5
= control target key start
LH: loop header
LB: loop body
LE: loop exit
PB: predicated region body
PF: predicated region fallthrough
CT: control target
= control target key end

     0   :  { %s111_s0 = inlined_call_operand.vmem [shape: bf16[32,128], index: 0, kind: input, shape index: {}]   ;;  %s112_s1 = inlined_call_operand.vmem [shape: f32[1,128], index: 1, kind: input, shape index: {}]   ;;  %s113_s2 = inlined_call_operand.vmem [shape: f32[1,128], index: 2, kind: input, shape index: {}]   ;;  %s114_s3 = inlined_call_operand.vmem [shape: f32[32,128], index: 3, kind: output, shape index: {}]  }
   0x1   :  { %v59_v0 = vld [vmem:[%s111_s0] sm:$0xff]   ;;  %v66_v4 = vld [vmem:[%s111_s0 + $0x8] sm:$0xff]  }
   0x2   :  { %v56_v1 = vld [vmem:[%s112_s1] ss:$0 sm:$0xff]  ;;  %v60_v2 = vunpack.c.l.bf16 %v59_v0  ;;  %v61_v3 = vunpack.c.h.bf16 %v59_v0  ;;  %v64_v6 = vunpack.c.l.bf16 %v66_v4  ;;  %v65_v7 = vunpack.c.h.bf16 %v66_v4 }
   0x3   :  { %v57_v5 = vld [vmem:[%s113_s2] ss:$0 sm:$0xff] }
   0x4   :  { %v29_v8 = vmul.f32 %v60_v2, %v56_v1  ;;  %v30_v9 = vmul.f32 %v61_v3, %v56_v1  ;;  %v31_v10 = vmul.f32 %v64_v6, %v56_v1  ;;  %v32_v11 = vmul.f32 %v65_v7, %v56_v1 }
   0x6   :  { %v40_v12 = vadd.f32 %v57_v5, %v29_v8  ;;  %v41_v13 = vadd.f32 %v57_v5, %v30_v9  ;;  %v42_v14 = vadd.f32 %v57_v5, %v31_v10  ;;  %v43_v15 = vadd.f32 %v57_v5, %v32_v11 }
   0x8   :  { %v44_v16 = vmax.f32 %v40_v12, 0.0  ;;  %v45_v17 = vmax.f32 %v41_v13, 0.0  ;;  %v46_v18 = vmax.f32 %v42_v14, 0.0  ;;  %v47_v19 = vmax.f32 %v43_v15, 0.0 }
   0xa   :  { %48 = vst [vmem:[%s114_s3] sm:$0xff] %v44_v16  ;;  %49 = vst [vmem:[%s114_s3 + $0x8] sm:$0xff] %v45_v17 }
   0xb   :  { %50 = vst [vmem:[%s114_s3 + $0x10] sm:$0xff] %v46_v18  ;;  %51 = vst [vmem:[%s114_s3 + $0x18] sm:$0xff] %v47_v19 }

</bundles_post_ra>
